<compile_context>
chip_gen: v6e
topology: v6e:2x2x1
jax: 0.10.0
libtpu: 0.0.40
codegen_flags: <defaults>
</compile_context>

<pallas_src>
import jax
import jax.numpy as jnp
from jax import lax
from jax.experimental import pallas as pl
from jax.experimental.pallas import tpu as pltpu

EPS = 1e-6
TILE_BYTES = 2 * 1024 * 1024   # ~2 MiB per operand per tile (x3 operands, x2 buffers = 12 MiB)


def _make_pcen_kernel(alpha, delta, r):
    alpha = float(alpha)
    delta = float(delta)
    r = float(r)
    bias = delta ** r                       # constant-folded at trace time
    use_rsqrt = (r == 0.5) and (delta > 0.0)

    def kernel(x_ref, s_ref, o_ref):
        x = x_ref[...]
        s = s_ref[...]
        # smooth = (eps + smoother) ** (-alpha); guard the base so negative
        # smoother values can't NaN the fractional power (1 free VALU op).
        base = jnp.maximum(s, 0.0) + EPS
        smooth = jnp.power(base, -alpha)
        # Guard x*smooth >= 0 so the fractional root stays real; with delta > 0
        # this also makes v strictly positive.
        v = jnp.maximum(x * smooth, 0.0) + delta
        if use_rsqrt:
            # r == 0.5 specialization: sqrt(v) = v * rsqrt(v); rsqrt is a single
            # native EUP op (vs exp+log for a pow lowering).
            o_ref[...] = v * lax.rsqrt(v) - bias
        else:
            o_ref[...] = jnp.power(v, r) - bias

    return kernel


def pcen(x, smoother, alpha=0.98, delta=2.0, r=0.5):
    """PCEN forward. x, smoother: same shape (e.g. (B, C, F, T)), float32."""
    assert x.shape == smoother.shape
    orig_shape = x.shape
    total = int(x.size)

    # Pick a 2D layout with NO host-side padding.  Prefer a lane-dense column
    # count (large multiple of 128 -> unmasked vst); otherwise keep the
    # original last dim at full extent (a block dim equal to the full array
    # dim satisfies the (8,128) rule even if it isn't 128-aligned).
    cols = None
    for c in (2048, 1024, 512, 256, 128):
        if total % c == 0:
            cols = c
            break
    if cols is None:
        cols = orig_shape[-1]
    rows = total // cols

    x2 = x.reshape(rows, cols)           # free (contiguous) reshape, no copy
    s2 = smoother.reshape(rows, cols)

    # Tile sizing: ~TILE_BYTES per operand per tile, block_rows a multiple of 8
    # (required for a non-full row block).  For small inputs use a single
    # full-extent block.
    itemsize = jnp.dtype(x.dtype).itemsize
    budget_rows = max(8, (TILE_BYTES // (cols * itemsize)) // 8 * 8)
    if rows <= budget_rows:
        block_rows = rows                # full extent: single tile
    else:
        # Keep the grid balanced (>= ~8 tiles) so v7x's two TensorCores both
        # get work, without shrinking tiles below what the budget allows.
        balanced = max(8, (pl.cdiv(rows, 8) // 8) * 8)
        block_rows = min(budget_rows, balanced)
    num_tiles = pl.cdiv(rows, block_rows)

    kernel = _make_pcen_kernel(alpha, delta, r)

    out2 = pl.pallas_call(
        kernel,
        out_shape=jax.ShapeDtypeStruct((rows, cols), x.dtype),
        grid=(num_tiles,),
        in_specs=[
            pl.BlockSpec((block_rows, cols), lambda i: (i, 0)),   # x
            pl.BlockSpec((block_rows, cols), lambda i: (i, 0)),   # smoother
        ],
        out_specs=pl.BlockSpec((block_rows, cols), lambda i: (i, 0)),
        compiler_params=pltpu.CompilerParams(
            dimension_semantics=("parallel",),
        ),
    )(x2, s2)

    # Exact-size reshape back (no slicing, no extra HBM traffic).
    return out2.reshape(orig_shape)


if __name__ == "__main__":
    key = jax.random.PRNGKey(0)
    k1, k2 = jax.random.split(key)
    B, C, F, T = 2, 4, 16, 16
    # spectrogram-like non-negative inputs
    x = jax.random.uniform(k1, (B, C, F, T), dtype=jnp.float32) * 10.0
    smoother = jax.random.uniform(k2, (B, C, F, T), dtype=jnp.float32) * 10.0

    out = pcen(x, smoother)
    out = jax.block_until_ready(out)

    # reference check (plain JAX, mirrors the PyTorch forward)
    alpha, delta, r = 0.98, 2.0, 0.5
    smooth_ref = (EPS + smoother) ** (-alpha)
    ref = (x * smooth_ref + delta) ** r - delta ** r
    assert out.shape == x.shape
    assert jnp.allclose(out, ref, atol=1e-4, rtol=1e-4), "mismatch vs reference"

    print("KERNEL_OK")
</pallas_src>

<mosaic_0001>
module attributes {stable_mosaic.version = 11 : i64} {
  func.func @kernel(%arg0: i32, %arg1: memref<1x2048xf32, #tpu.memory_space<vmem>>, %arg2: memref<1x2048xf32, #tpu.memory_space<vmem>>, %arg3: memref<1x2048xf32, #tpu.memory_space<vmem>>) attributes {dimension_semantics = [#tpu.dimension_semantics<parallel>], iteration_bounds = array<i64: 1>, scalar_prefetch = 0 : i64, scratch_operands = 0 : i64, tpu.core_type = #tpu.core_type<tc>, window_params = [{transform_indices = @transform_0, window_bounds = array<i64: 1, 2048>}, {transform_indices = @transform_1, window_bounds = array<i64: 1, 2048>}, {transform_indices = @transform_2, window_bounds = array<i64: 1, 2048>}]} {
    %c0 = arith.constant 0 : index
    %c0_0 = arith.constant 0 : index
    %0 = vector.load %arg1[%c0, %c0_0] : memref<1x2048xf32, #tpu.memory_space<vmem>>, vector<1x2048xf32>
    %c0_1 = arith.constant 0 : index
    %c0_2 = arith.constant 0 : index
    %1 = vector.load %arg2[%c0_1, %c0_2] : memref<1x2048xf32, #tpu.memory_space<vmem>>, vector<1x2048xf32>
    %cst = arith.constant 0.000000e+00 : f32
    %2 = vector.broadcast %cst : f32 to vector<1x2048xf32>
    %3 = arith.maximumf %1, %2 : vector<1x2048xf32>
    %cst_3 = arith.constant 9.99999997E-7 : f32
    %4 = vector.broadcast %cst_3 : f32 to vector<1x2048xf32>
    %5 = arith.addf %3, %4 : vector<1x2048xf32>
    %cst_4 = arith.constant -9.800000e-01 : f32
    %6 = vector.broadcast %cst_4 : f32 to vector<1x2048xf32>
    %7 = math.powf %5, %6 : vector<1x2048xf32>
    %8 = arith.mulf %0, %7 : vector<1x2048xf32>
    %cst_5 = arith.constant 0.000000e+00 : f32
    %9 = vector.broadcast %cst_5 : f32 to vector<1x2048xf32>
    %10 = arith.maximumf %8, %9 : vector<1x2048xf32>
    %cst_6 = arith.constant 2.000000e+00 : f32
    %11 = vector.broadcast %cst_6 : f32 to vector<1x2048xf32>
    %12 = arith.addf %10, %11 : vector<1x2048xf32>
    %13 = math.rsqrt %12 : vector<1x2048xf32>
    %14 = arith.mulf %12, %13 : vector<1x2048xf32>
    %cst_7 = arith.constant 1.41421354 : f32
    %15 = vector.broadcast %cst_7 : f32 to vector<1x2048xf32>
    %16 = arith.subf %14, %15 : vector<1x2048xf32>
    %c0_8 = arith.constant 0 : index
    %c0_9 = arith.constant 0 : index
    %17 = vector.load %arg3[%c0_8, %c0_9] : memref<1x2048xf32, #tpu.memory_space<vmem>>, vector<1x2048xf32>
    tpu.vector_store %arg3[%c0_8, %c0_9], %16 {strides = array<i32>} : memref<1x2048xf32, #tpu.memory_space<vmem>>, vector<1x2048xf32>,
    return
  }
  func.func @transform_0(%arg0: i32) -> (i32, i32) {
    %c0_i32 = arith.constant 0 : i32
    %c0_i32_0 = arith.constant 0 : i32
    return %arg0, %c0_i32 : i32, i32
  }
  func.func @transform_1(%arg0: i32) -> (i32, i32) {
    %c0_i32 = arith.constant 0 : i32
    %c0_i32_0 = arith.constant 0 : i32
    return %arg0, %c0_i32 : i32, i32
  }
  func.func @transform_2(%arg0: i32) -> (i32, i32) {
    %c0_i32 = arith.constant 0 : i32
    %c0_i32_0 = arith.constant 0 : i32
    return %arg0, %c0_i32 : i32, i32
  }
}

</mosaic_0001>

<bundles_post_ra>
// kernel: tpu_custom_call.1
= control target key start
LH: loop header
LB: loop body
LE: loop exit
PB: predicated region body
PF: predicated region fallthrough
CT: control target
= control target key end

     0   :  { %7 = vsyncpa [#allocation3], 0  ;;  %s242_s0 = inlined_call_operand.hbm [shape: f32[1,2048], index: 0, kind: input, shape index: {}]   ;;  %s243_s1 = inlined_call_operand.hbm [shape: f32[1,2048], index: 1, kind: input, shape index: {}]   ;;  %s244_s2 = inlined_call_operand.hbm [shape: f32[1,2048], index: 2, kind: output, shape index: {}]  }
   0x1   :  { %8 = vsyncpa [#allocation6], 0 }
   0x2   :  { %9 = vsyncpa [#allocation4], 0  ;;  %s215_s9 = smov [#allocation2]   ;;  %s216_s11 = smov [#allocation5]  }
   0x3   :  { %s16_s10 = sshll.u32 %s215_s9, 4  ;;  %s26_s12 = sshll.u32 %s216_s11, 4  ;;  %s17_s10 = int_to_ptr.vmem [resolvable:$true] %s16_s10  ;;  %s27_s12 = int_to_ptr.vmem [resolvable:$true] %s26_s12 }
   0x4   :  { %s157_s13 = scalar_lea.vmem %s17_s10, 256  ;;  %p162_p1 = scmp.lt.s32.totalorder %s17_s10, %s17_s10 }
   0x5   :  { %p158_p0 = scmp.ne.s32.totalorder %s17_s10, %s157_s13  ;;  %p163_p2 = scmp.lt.s32.totalorder %s157_s13, %s157_s13 }
   0x7   :  { %p164_p3 = por %p163_p2, %p162_p1 }
   0x9   :  { %p165_p4 = pnand %p164_p3, %p158_p0 }
   0xb   :  { %168 = shalt.err (!%p165_p4)
}
   0xc   :  { %19 = dma.hbm_to_vmem [thread:$0]  %s242_s0, 256, %s17_s10, [#allocation3]  }
   0xd   :  { %s177_s16 = scalar_lea.vmem %s27_s12, 256  ;;  %p182_p6 = scmp.lt.s32.totalorder %s27_s12, %s27_s12 }
   0xe   :  { %p178_p5 = scmp.ne.s32.totalorder %s27_s12, %s177_s16  ;;  %p183_p7 = scmp.lt.s32.totalorder %s177_s16, %s177_s16 }
  0x10   :  { %p184_p8 = por %p183_p7, %p182_p6 }
  0x12   :  { %p185_p9 = pnand %p184_p8, %p178_p5 }
  0x14   :  { %188 = shalt.err (!%p185_p9)
}
  0x15   :  { %29 = dma.hbm_to_vmem [thread:$0]  %s243_s1, 256, %s27_s12, [#allocation6]  }
  0x16   :  { %209 = dma.done.wait [#allocation3], 256  }
  0x17   :  { %210 = vsyncadd [#allocation3], 4294967040 }
  0x18   :  { %211 = dma.done.wait [#allocation6], 256  }
  0x19   :  { %212 = vsyncadd [#allocation6], 4294967040  ;;  %v38_v0 = vld [vmem:[#allocation5] sm:$0xff]  ;;  %v39_v2 = vld [vmem:[#allocation5 + $0x8] sm:$0xff]  ;;  %s217_s0 = smov [#allocation7]  }
  0x1a   :  { %v40_v1 = vmax.f32 %v38_v0, 0.0  ;;  %v41_v3 = vmax.f32 %v39_v2, 0.0  ;;  %v36_v17 = vld [vmem:[#allocation2] sm:$0xff]  ;;  %v37_v21 = vld [vmem:[#allocation2 + $0x8] sm:$0xff]  ;;  %s66_s1 = sshll.u32 %s217_s0, 4  ;;  %s67_s1 = int_to_ptr.vmem [resolvable:$true] %s66_s1 }
  0x1b   :  { %s189_s19 = scalar_lea.vmem %s67_s1, 256  ;;  %p194_p11 = scmp.lt.s32.totalorder %s67_s1, %s67_s1 }
  0x1c   :  { %v42_v4 = vadd.f32 1e-06, %v40_v1  ;;  %v43_v5 = vadd.f32 1e-06, %v41_v3  ;;  %p190_p10 = scmp.ne.s32.totalorder %s67_s1, %s189_s19  ;;  %p195_p12 = scmp.lt.s32.totalorder %s189_s19, %s189_s19 }
  0x1e   :  { %v82_v6 = vand.u32 2147483647, %v42_v4  ;;  %v110_v7 = vand.u32 2147483647, %v43_v5  ;;  %vm86_vm0 = vcmp.lt.f32.partialorder %v42_v4, 0  ;;  %vm87_vm1 = vcmp.eq.f32.partialorder %v42_v4, 0  ;;  %p196_p13 = por %p195_p12, %p194_p11 }
  0x1f   :  { %vm114_vm2 = vcmp.lt.f32.partialorder %v43_v5, 0  ;;  %vm115_vm4 = vcmp.eq.f32.partialorder %v43_v5, 0  ;;  %vm101_vm5 = vcmp.ne.f32.partialorder %v42_v4, %v42_v4  ;;  %vm88_vm7 = vcmp.eq.f32.partialorder %v42_v4, 1065353216 }
  0x20   :  { %137 = vlog2.f32 %v82_v6  ;;  %vm91_vm3 = vcmp.eq.f32.partialorder %v82_v6, 2139095040  ;;  %vm119_vm6 = vcmp.eq.f32.partialorder %v110_v7, 2139095040  ;;  %vm129_vm8 = vcmp.ne.f32.partialorder %v43_v5, %v43_v5  ;;  %p197_p0 = pnand %p196_p13, %p190_p10 }
  0x21   :  { %139 = vlog2.f32 %v110_v7  ;;  %vm116_vm9 = vcmp.eq.f32.partialorder %v43_v5, 1065353216 }
  0x2d   :  { %v138_v8 = vpop.eup %137 }
  0x2e   :  { %v140_v9 = vpop.eup %139  ;;  %v84_v10 = vmul.f32 -0.98, %v138_v8 }
  0x2f   :  { %v112_v11 = vmul.f32 -0.98, %v140_v9 }
  0x30   :  { %141 = vpow2.f32 %v84_v10 }
  0x31   :  { %143 = vpow2.f32 %v112_v11 }
  0x3d   :  { %v142_v12 = vpop.eup %141 }
  0x3e   :  { %v144_v13 = vpop.eup %143  ;;  %v92_v14 = vsel %vm86_vm0, 2143289344, %v142_v12 }
  0x3f   :  { %v93_v15 = vsel %vm87_vm1, 2139095040, %v92_v14  ;;  %v120_v16 = vsel %vm114_vm2, 2143289344, %v144_v13 }
  0x40   :  { %v100_v18 = vsel %vm91_vm3, 0, %v93_v15  ;;  %v121_v19 = vsel %vm115_vm4, 2139095040, %v120_v16 }
  0x41   :  { %v104_v20 = vsel %vm101_vm5, 2143289344, %v100_v18  ;;  %v128_v22 = vsel %vm119_vm6, 0, %v121_v19 }
  0x42   :  { %v105_v23 = vsel %vm88_vm7, 1065353216, %v104_v20  ;;  %v132_v24 = vsel %vm129_vm8, 2143289344, %v128_v22 }
  0x43   :  { %v46_v25 = vmul.f32 %v105_v23, %v36_v17  ;;  %v133_v26 = vsel %vm116_vm9, 1065353216, %v132_v24 }
  0x44   :  { %v47_v27 = vmul.f32 %v133_v26, %v37_v21 }
  0x45   :  { %v48_v28 = vmax.f32 %v46_v25, 0.0 }
  0x46   :  { %v49_v29 = vmax.f32 %v47_v27, 0.0 }
  0x47   :  { %v50_v30 = vadd.f32 2.0, %v48_v28 }
  0x48   :  { %v51_v31 = vadd.f32 2.0, %v49_v29 }
  0x49   :  { %145 = vrsqrt.f32 %v50_v30 }
  0x4a   :  { %147 = vrsqrt.f32 %v51_v31 }
  0x56   :  { %v146_v32 = vpop.eup %145 }
  0x57   :  { %v148_v33 = vpop.eup %147  ;;  %v54_v34 = vmul.f32 %v146_v32, %v50_v30 }
  0x58   :  { %v55_v35 = vmul.f32 %v148_v33, %v51_v31 }
  0x59   :  { %v76_v36 = vadd.f32 -1.4142135, %v54_v34 }
  0x5a   :  { %v77_v37 = vadd.f32 -1.4142135, %v55_v35 }
  0x5b   :  { %58 = vst [vmem:[#allocation7] sm:$0xff] %v76_v36 }
  0x5c   :  { %59 = vst [vmem:[#allocation7 + $0x8] sm:$0xff] %v77_v37 }
  0x5d   :  { %200 = shalt.err (!%p197_p0)
}
  0x5e   :  { %69 = dma.vmem_to_hbm [thread:$0]  %s67_s1, 256, %s244_s2, [#allocation4]  }
  0x5f   :  { %213 = dma.done.wait [#allocation4], 256  }
  0x60   :  { %214 = vsyncadd [#allocation4], 4294967040 }
  0x61   :  { %73 = vsyncpa [#allocation3], 1 }
  0x62   :  { %74 = vsyncpa [#allocation6], 1 }
  0x63   :  { %75 = vsyncpa [#allocation4], 1 }

</bundles_post_ra>
